<compile_context>
chip_gen: v5e
topology: v5e:2x2
jax: 0.10.0
libtpu: 0.0.40
codegen_flags: <defaults>
</compile_context>

<pallas_src>
import functools

import jax
import jax.numpy as jnp
from jax.experimental import pallas as pl
from jax.experimental.pallas import tpu as pltpu


def _kan_kernel(x_ref, kidx_ref, c_ref, o_ref, *, nk, x_min, x_max):
    """One (block_b, block_o) output tile.

    x_ref    : (block_b, in_f)            inputs
    kidx_ref : (1, in_f*nk) int32         knot index of each k-major column
    c_ref    : (in_f*nk, block_o)         coeffs, k-major rows
    o_ref    : (block_b, block_o)         output tile (f32)
    """
    x = x_ref[...].astype(jnp.float32)                          # (TB, in_f)

    # Knot-space position / interval / fraction at narrow (TB, in_f) width.
    pos = (x - x_min) / (x_max - x_min) * (nk - 1)
    id0 = jnp.clip(jnp.floor(pos), 0.0, float(nk - 2)).astype(jnp.int32)
    t = pos - id0.astype(jnp.float32)                           # NOT clamped (matches torch)

    # Expand along lanes, k-major: col = k*in_f + i (pure lane tiling, replaces
    # the old expansion-matrix matmul).
    id0_w = jnp.tile(id0, (1, nk))                              # (TB, in_f*nk) int32
    t_w = jnp.tile(t, (1, nk))                                  # (TB, in_f*nk) f32
    k_idx = kidx_ref[...]                                       # (1, in_f*nk), broadcasts

    # Gather-as-select: piecewise-linear interpolation weights (exact int compares).
    w = jnp.where(k_idx == id0_w, 1.0 - t_w,
                  jnp.where(k_idx == id0_w + 1, t_w, 0.0))

    # Contract over (knots, in_f) on the MXU -> (TB, block_o), f32 accumulate.
    o_ref[...] = jnp.dot(w.astype(c_ref.dtype), c_ref[...],
                         preferred_element_type=jnp.float32).astype(o_ref.dtype)


def _round_up(v, m):
    return (v + m - 1) // m * m


def _pick_block_b(B):
    # Prefer large batch tiles (MXU M utilization) while keeping >=2 grid steps
    # so both v7x TensorCores get work; fall back to whatever divides B.
    for cand in (256, 128, 64, 32, 16, 8):
        if B % cand == 0 and B // cand >= 2:
            return cand
    for cand in (256, 128, 64, 32, 16, 8):
        if B % cand == 0:
            return cand
    return B


def kan_layer_pallas(x, coeffs, knots, *, block_b=None, block_o=None,
                     coeff_dtype=jnp.float32):
    B, in_f = x.shape
    out_f, in_f2, nk = coeffs.shape
    assert in_f == in_f2
    cols = in_f * nk

    # Only the knot endpoints are used; they are baked as compile-time constants
    # (knots is a fixed buffer in the torch module, so it is concrete here).
    x_min = float(knots[0])
    x_max = float(knots[-1])

    if block_b is None:
        block_b = _pick_block_b(B)
    assert B % block_b == 0 and (block_b % 8 == 0 or block_b == B)

    # Lane-dense output: pad out_f to a multiple of 128 (zero coeff columns
    # contribute nothing); tile it in 256 (v6e/v7x MXU) or 128 (v5e) chunks.
    out_f_pad = _round_up(out_f, 128)
    if block_o is None:
        block_o = 256 if out_f_pad % 256 == 0 else 128
    assert out_f_pad % block_o == 0

    # Coefficients k-major & lane-dense: row k*in_f + i  <->  coeffs[:, i, k].
    c_flat = coeffs.transpose(2, 1, 0).reshape(cols, out_f).astype(coeff_dtype)
    c_flat = jnp.pad(c_flat, ((0, 0), (0, out_f_pad - out_f)))

    # Grid-invariant knot index of each k-major column, hoisted out of the kernel.
    k_idx = (jnp.arange(cols, dtype=jnp.int32) // in_f).reshape(1, cols)

    # Rough per-step VMEM need (double-buffered x/out, coeff + k_idx tiles, and
    # the w / tiled temporaries); only override the scoped default if needed.
    est = (2 * block_b * in_f * 4 + 2 * block_b * block_o * 4
           + 2 * cols * block_o * jnp.dtype(coeff_dtype).itemsize
           + cols * 4 + 4 * block_b * cols * 4)
    vmem_limit = None if est <= 32 * 1024 * 1024 else min(est, 100 * 1024 * 1024)
    # TODO(synk): for very large in_f*nk add a reduction grid axis over cols with
    # an f32 accumulator scratch so the coeff/w working set fits v7x's 64 MiB VMEM.

    kernel = functools.partial(_kan_kernel, nk=nk, x_min=x_min, x_max=x_max)

    out = pl.pallas_call(
        kernel,
        out_shape=jax.ShapeDtypeStruct((B, out_f_pad), jnp.float32),
        grid_spec=pltpu.PrefetchScalarGridSpec(
            num_scalar_prefetch=0,
            grid=(B // block_b, out_f_pad // block_o),
            in_specs=[
                pl.BlockSpec((block_b, in_f), lambda i, j: (i, 0)),   # x tile
                pl.BlockSpec((1, cols), lambda i, j: (0, 0)),         # knot idx per col
                pl.BlockSpec((cols, block_o), lambda i, j: (0, j)),   # coeff tile
            ],
            out_specs=pl.BlockSpec((block_b, block_o), lambda i, j: (i, j)),
        ),
        compiler_params=pltpu.CompilerParams(
            dimension_semantics=("parallel", "parallel"),
            vmem_limit_bytes=vmem_limit),
    )(x, k_idx, c_flat)

    return out[:, :out_f]


def kan_layer_ref(x, coeffs, knots):
    """Pure-JAX reference mirroring the PyTorch forward exactly."""
    B, in_f = x.shape
    out_f, _, nk = coeffs.shape
    pos = (x - knots[0]) / (knots[-1] - knots[0]) * (nk - 1)        # (B, in_f)
    id0 = jnp.clip(jnp.floor(pos).astype(jnp.int32), 0, nk - 2)
    t = pos - id0.astype(jnp.float32)
    oh0 = jax.nn.one_hot(id0, nk, dtype=jnp.float32)                # (B, in_f, nk)
    oh1 = jax.nn.one_hot(id0 + 1, nk, dtype=jnp.float32)
    c0 = jnp.einsum('oik,bik->boi', coeffs, oh0)
    c1 = jnp.einsum('oik,bik->boi', coeffs, oh1)
    phi = c0 * (1.0 - t)[:, None, :] + c1 * t[:, None, :]
    return phi.sum(axis=2)                                          # (B, out_f)


if __name__ == "__main__":
    B, in_f, out_f, nk = 16, 8, 16, 16
    key = jax.random.PRNGKey(0)
    kx, kc = jax.random.split(key)

    x = jax.random.normal(kx, (B, in_f), dtype=jnp.float32)
    coeffs = 0.05 * jax.random.normal(kc, (out_f, in_f, nk), dtype=jnp.float32)
    knots = jnp.linspace(-1.0, 1.0, nk)

    out = kan_layer_pallas(x, coeffs, knots)
    jax.block_until_ready(out)

    ref = kan_layer_ref(x, coeffs, knots)
    assert out.shape == (B, out_f)
    assert jnp.allclose(out, ref, atol=1e-5, rtol=1e-5), (out, ref)

    print("KERNEL_OK")
</pallas_src>

<mosaic_0001>
module attributes {stable_mosaic.version = 11 : i64} {
  func.func @_kan_kernel(%arg0: i32, %arg1: i32, %arg2: memref<8x8xf32, #tpu.memory_space<vmem>>, %arg3: memref<1x128xi32, #tpu.memory_space<vmem>>, %arg4: memref<128x128xf32, #tpu.memory_space<vmem>>, %arg5: memref<8x128xf32, #tpu.memory_space<vmem>>) attributes {dimension_semantics = [#tpu.dimension_semantics<parallel>, #tpu.dimension_semantics<parallel>], iteration_bounds = array<i64: 2, 1>, scalar_prefetch = 0 : i64, scratch_operands = 0 : i64, tpu.core_type = #tpu.core_type<tc>, window_params = [{transform_indices = @transform_0, window_bounds = array<i64: 8, 8>}, {pipeline_mode = #tpu.pipeline_mode<synchronous>, transform_indices = @transform_1, window_bounds = array<i64: 1, 128>}, {transform_indices = @transform_2, window_bounds = array<i64: 128, 128>}, {transform_indices = @transform_3, window_bounds = array<i64: 8, 128>}]} {
    %c0 = arith.constant 0 : index
    %c0_0 = arith.constant 0 : index
    %0 = vector.load %arg2[%c0, %c0_0] : memref<8x8xf32, #tpu.memory_space<vmem>>, vector<8x8xf32>
    %cst = arith.constant -1.000000e+00 : f32
    %1 = vector.broadcast %cst : f32 to vector<8x8xf32>
    %2 = arith.subf %0, %1 : vector<8x8xf32>
    %cst_1 = arith.constant 2.000000e+00 : f32
    %3 = vector.broadcast %cst_1 : f32 to vector<8x8xf32>
    %4 = arith.divf %2, %3 : vector<8x8xf32>
    %cst_2 = arith.constant 1.500000e+01 : f32
    %5 = vector.broadcast %cst_2 : f32 to vector<8x8xf32>
    %6 = arith.mulf %4, %5 : vector<8x8xf32>
    %7 = math.floor %6 : vector<8x8xf32>
    %cst_3 = arith.constant 0.000000e+00 : f32
    %cst_4 = arith.constant 1.400000e+01 : f32
    %8 = vector.broadcast %cst_3 : f32 to vector<8x8xf32>
    %9 = arith.maximumf %8, %7 : vector<8x8xf32>
    %10 = vector.broadcast %cst_4 : f32 to vector<8x8xf32>
    %11 = arith.minimumf %10, %9 : vector<8x8xf32>
    %12 = arith.fptosi %11 : vector<8x8xf32> to vector<8x8xi32>
    %13 = arith.sitofp %12 : vector<8x8xi32> to vector<8x8xf32>
    %14 = arith.subf %6, %13 : vector<8x8xf32>
    %15 = tpu.concatenate %12, %12, %12, %12, %12, %12, %12, %12, %12, %12, %12, %12, %12, %12, %12, %12 in 1 : vector<8x8xi32>, vector<8x8xi32>, vector<8x8xi32>, vector<8x8xi32>, vector<8x8xi32>, vector<8x8xi32>, vector<8x8xi32>, vector<8x8xi32>, vector<8x8xi32>, vector<8x8xi32>, vector<8x8xi32>, vector<8x8xi32>, vector<8x8xi32>, vector<8x8xi32>, vector<8x8xi32>, vector<8x8xi32> -> vector<8x128xi32>
    %16 = tpu.concatenate %14, %14, %14, %14, %14, %14, %14, %14, %14, %14, %14, %14, %14, %14, %14, %14 in 1 : vector<8x8xf32>, vector<8x8xf32>, vector<8x8xf32>, vector<8x8xf32>, vector<8x8xf32>, vector<8x8xf32>, vector<8x8xf32>, vector<8x8xf32>, vector<8x8xf32>, vector<8x8xf32>, vector<8x8xf32>, vector<8x8xf32>, vector<8x8xf32>, vector<8x8xf32>, vector<8x8xf32>, vector<8x8xf32> -> vector<8x128xf32>
    %c0_5 = arith.constant 0 : index
    %c0_6 = arith.constant 0 : index
    %17 = vector.load %arg3[%c0_5, %c0_6] : memref<1x128xi32, #tpu.memory_space<vmem>>, vector<1x128xi32>
    %18 = vector.broadcast %17 : vector<1x128xi32> to vector<8x128xi32>
    %19 = arith.cmpi eq, %18, %15 : vector<8x128xi32>
    %cst_7 = arith.constant 1.000000e+00 : f32
    %20 = vector.broadcast %cst_7 : f32 to vector<8x128xf32>
    %21 = arith.subf %20, %16 : vector<8x128xf32>
    %c1_i32 = arith.constant 1 : i32
    %22 = vector.broadcast %c1_i32 : i32 to vector<8x128xi32>
    %23 = arith.addi %15, %22 : vector<8x128xi32>
    %24 = vector.broadcast %17 : vector<1x128xi32> to vector<8x128xi32>
    %25 = arith.cmpi eq, %24, %23 : vector<8x128xi32>
    %cst_8 = arith.constant 0.000000e+00 : f32
    %26 = vector.broadcast %cst_8 : f32 to vector<8x128xf32>
    %27 = arith.select %25, %16, %26 : vector<8x128xi1>, vector<8x128xf32>
    %28 = arith.select %19, %21, %27 : vector<8x128xi1>, vector<8x128xf32>
    %c0_9 = arith.constant 0 : index
    %c0_10 = arith.constant 0 : index
    %29 = vector.load %arg4[%c0_9, %c0_10] : memref<128x128xf32, #tpu.memory_space<vmem>>, vector<128x128xf32>
    %cst_11 = arith.constant dense<0.000000e+00> : vector<8x128xf32>
    %30 = tpu.matmul %28, %29, %cst_11 {dimension_numbers = #tpu.dot_dimension_numbers<[1], [0], [0], [1], [0, 0, 1, 1], [], []>} : vector<8x128xf32>, vector<128x128xf32>, vector<8x128xf32> -> vector<8x128xf32>
    %c0_12 = arith.constant 0 : index
    %c0_13 = arith.constant 0 : index
    %31 = vector.load %arg5[%c0_12, %c0_13] : memref<8x128xf32, #tpu.memory_space<vmem>>, vector<8x128xf32>
    tpu.vector_store %arg5[%c0_12, %c0_13], %30 {strides = array<i32>} : memref<8x128xf32, #tpu.memory_space<vmem>>, vector<8x128xf32>,
    return
  }
  func.func @transform_0(%arg0: i32, %arg1: i32) -> (i32, i32) {
    %c0_i32 = arith.constant 0 : i32
    %c0_i32_0 = arith.constant 0 : i32
    return %arg0, %c0_i32 : i32, i32
  }
  func.func @transform_1(%arg0: i32, %arg1: i32) -> (i32, i32) {
    %c0_i32 = arith.constant 0 : i32
    %c0_i32_0 = arith.constant 0 : i32
    %c0_i32_1 = arith.constant 0 : i32
    return %c0_i32, %c0_i32_0 : i32, i32
  }
  func.func @transform_2(%arg0: i32, %arg1: i32) -> (i32, i32) {
    %c0_i32 = arith.constant 0 : i32
    %c0_i32_0 = arith.constant 0 : i32
    return %c0_i32, %arg1 : i32, i32
  }
  func.func @transform_3(%arg0: i32, %arg1: i32) -> (i32, i32) {
    %c0_i32 = arith.constant 0 : i32
    return %arg0, %arg1 : i32, i32
  }
}

</mosaic_0001>

<bundles_post_ra>
// kernel: tpu_custom_call.1
= control target key start
LH: loop header
LB: loop body
LE: loop exit
PB: predicated region body
PF: predicated region fallthrough
CT: control target
= control target key end

     0   :  { %8 = vsyncpa [#allocation3], 0  ;;  %s925_s0 = inlined_call_operand.vmem [shape: f32[16,8], index: 0, kind: input, shape index: {}]   ;;  %s926_s1 = inlined_call_operand.vmem [shape: s32[1,128], index: 1, kind: input, shape index: {}]   ;;  %s927_s2 = inlined_call_operand.hbm [shape: f32[128,128], index: 2, kind: input, shape index: {}]   ;;  %s928_s3 = inlined_call_operand.hbm [shape: f32[16,128], index: 3, kind: output, shape index: {}]  }
   0x1   :  { %9 = vsyncpa [#allocation4], 0 }
   0x2   :  { %11 = vsyncpa [#allocation4 + $0x1], 0  ;;  %s742_s12 = smov 0   ;;  %s744_s13 = smov 0  }
   0x3   :  { %s746_s14 = smov 0   ;;  %s748_s15 = smov 0  }
   0x4   :  { %s750_s16 = smov 0   ;;  %s752_s17 = smov 0  }
   0x5 LB: > { %s486_s18 = sadd.s32 4294967295, %s701_s17   ;;  %s487_s19 = sadd.s32 4294967294, %s701_s17   ;;  %s701_s17 = sphi %s752_s17, %s17_s17   ;;  %s697_s16 = sphi %s750_s16, %s935_s16   ;;  %s693_s15 = sphi %s748_s15, %s934_s15   ;;  %s689_s14 = sphi %s746_s14, %s933_s14   ;;  %s685_s13 = sphi %s744_s13, %s932_s13   ;;  %s681_s12 = sphi %s742_s12, %s931_s12  }
   0x6   : > { %s29_s20 = sadd.s32 1, %s697_s16  ;;  %s111_s21 = sadd.s32 1, %s689_s14 }
   0x7   : > { %p31_p0 = scmp.ge.s32.totalorder %s29_s20, 2  ;;  %p121_p1 = scmp.ne.s32.totalorder %s689_s14, %s685_s13 }
   0x8   : > { %p122_p2 = scmp.eq.s32.totalorder %s486_s18, 1  ;;  %p127_p3 = scmp.ne.s32.totalorder %s685_s13, %s681_s12 }
   0x9   : > { %s937_s20 = smov (%p31_p0, %s29_s20), 0  ;;  %p128_p5 = scmp.eq.s32.totalorder %s487_s19, 1 }
   0xa   : > { %p782_p4 = por %p122_p2, %p121_p1  ;;  %s106_s23 = ssub.s32 %s697_s16, %s937_s20 }
   0xb   : > { %p488_p6 = scmp.ge.s32.totalorder %s701_s17, 1  ;;  %p109_p7 = scmp.eq.s32.totalorder %s106_s23, 0 }
   0xc   : > { %p789_p8 = por %p128_p5, %p127_p3  ;;  %p135_p9 = scmp.lt.s32.totalorder %s701_s17, 3 }
   0xd   : > { %s795_s25 = scalar_select %p109_p7, %s689_s14, %s111_s21  }
   0xe   : > { %p136_p10 = pnand %p488_p6, %p135_p9  ;;  %p516_p11 = scmp.eq.s32.totalorder %s486_s18, 0 }
   0xf   : > { %s151_s28 = sshll.u32 %s927_s2, 4  ;;  %s703_s29 = smov [#allocation2]   ;;  %s152_s28 = int_to_ptr.hbm [resolvable:$true] %s151_s28 }
  0x10   : > { %p508_p12 = pneg %p136_p10  ;;  %s153_s30 = sshll.u32 %s703_s29, 4  ;;  %s154_s30 = int_to_ptr.vmem [resolvable:$true] %s153_s30 }
  0x11   : > { %s704_s4 = smov 128   ;;  %s705_s5 = smov 8  }
  0x12   : > { %p509_p13 = pnand %p516_p11, %p508_p12  ;;  %176 = sbr.rel (%p136_p10) target bundleno = 375 (0x177), region = 32 }
  0x14   : > { %511 = dma.hbm_to_vmem [thread:$0]  (!%p509_p13), %s152_s28, 2048, %s154_s30, [#allocation3], %s704_s4, %s704_s4, %s705_s5  }
  0x17   : > { %672 = dma.done.wait (%p516_p11), [#allocation3], 2048  }
  0x18   : > { %674 = vsyncadd (%p516_p11), [#allocation3], 4294965248  ;;  %p200_p0 = scmp.lt.s32.totalorder %s693_s15, 1  ;;  %v706_v0 = vmov 2.0   ;;  %s707_s11 = smov 24   ;;  %v365_v24 = vld [vmem:[#allocation2 + $0x78] sm:$0xff] }
  0x19   : > { %587 = vrcp.f32 %v706_v0  ;;  %s708_s18 = smov 8   ;;  %s709_s19 = smov 32   ;;  %366 = vmatpush.msra.mxu0 %v365_v24  ;;  %v364_v28 = vld [vmem:[#allocation2 + $0x70] sm:$0xff]  ;;  %v363_v29 = vld [vmem:[#allocation2 + $0x68] sm:$0xff]  ;;  %v362_v30 = vld [vmem:[#allocation2 + $0x60] sm:$0xff]  ;;  %vm251_vm1 = vcmask 64512  }
  0x1a   : > { %s201_s6 = scalar_select %p200_p0, %s693_s15, 1  ;;  %v361_v32 = vld [vmem:[#allocation2 + $0x58] sm:$0xff]  ;;  %v360_v35 = vld [vmem:[#allocation2 + $0x50] sm:$0xff]  ;;  %v359_v36 = vld [vmem:[#allocation2 + $0x48] sm:$0xff]  ;;  %vm253_vm2 = vcmask 130048   ;;  %vm255_vm3 = vcmask 195584  }
  0x1b   : > { %s710_s21 = smov 56   ;;  %s711_s23 = smov 16   ;;  %367 = vmatpush.msra.mxu0 %v364_v28  ;;  %v358_v37 = vld [vmem:[#allocation2 + $0x40] sm:$0xff]  ;;  %v357_v38 = vld [vmem:[#allocation2 + $0x38] sm:$0xff]  ;;  %v356_v42 = vld [vmem:[#allocation2 + $0x30] sm:$0xff]  ;;  %vm257_vm4 = vcmask 261120  }
  0x1c   : > { %s494_s7 = sshll.u32 %s201_s6, 3  ;;  %s712_s26 = smov 48   ;;  %v355_v43 = vld [vmem:[#allocation2 + $0x28] sm:$0xff]  ;;  %v354_v44 = vld [vmem:[#allocation2 + $0x20] sm:$0xff]  ;;  %v353_v45 = vld [vmem:[#allocation2 + $0x18] sm:$0xff]  ;;  %vm259_vm5 = vcmask 326656  }
  0x1d   : > { %s203_s10 = scalar_lea.vmem %s925_s0, %s494_s7  ;;  %s713_s27 = smov 40   ;;  %368 = vmatpush.msra.mxu0 %v363_v29  ;;  %v352_v51 = vld [vmem:[#allocation2 + $0x10] sm:$0xff]  ;;  %v351_v52 = vld [vmem:[#allocation2 + $0x8] sm:$0xff]  ;;  %v350_v54 = vld [vmem:[#allocation2] sm:$0xff]  ;;  %vm261_vm6 = vcmask 392192   ;;  %vm263_vm7 = vcmask 457728  }
  0x1e   : > { %v204_v3 = vld [vmem:[%s203_s10] sm:$0xff]  ;;  %s714_s28 = smov 72   ;;  %s715_s29 = smov 64   ;;  %vm265_vm8 = vcmask 523264   ;;  %vm267_vm9 = vcmask 588800   ;;  %vm269_vm10 = vcmask 654336  }
  0x1f   : > { %v588_v1 = vpop.eup %587  ;;  %v495_v6 = vadd.f32 1.0, %v204_v3  ;;  %s716_s30 = smov 80   ;;  %s717_s4 = smov 88   ;;  %369 = vmatpush.msra.mxu0 %v362_v30  ;;  %vm271_vm11 = vcmask 719872   ;;  %vm273_vm12 = vcmask 785408   ;;  %vm275_vm13 = vcmask 850944  }
  0x20   : > { %v207_v2 = vmul.f32 2.0, %v588_v1  ;;  %vm211_vm0 = vweird.f32 %v588_v1  ;;  %s718_s5 = smov 96   ;;  %s719_s6 = smov 104   ;;  %vm277_vm14 = vcmask 916480   ;;  %vm279_vm15 = vcmask 982016  }
  0x21   : > { %s720_s7 = smov 112   ;;  %s721_s8 = smov 120   ;;  %370 = vmatpush.msra.mxu0 %v361_v32  ;;  %v586_v28 = vld [vmem:[%s926_s1] ss:$0 sm:$0xff] }
  0x22   : > { %v208_v4 = vsub.f32 1.0, %v207_v2 }
  0x23   : > { %371 = vmatpush.msra.mxu0 %v360_v35 }
  0x24   : > { %v209_v5 = vmul.f32 %v588_v1, %v208_v4 }
  0x25   : > { %372 = vmatpush.msra.mxu0 %v359_v36 }
  0x26   : > { %v210_v7 = vadd.f32 %v588_v1, %v209_v5 }
  0x27   : > { %373 = vmatpush.msra.mxu0 %v358_v37 }
  0x28   : > { %v212_v8 = vsel %vm211_vm0, %v588_v1, %v210_v7 }
  0x29   : > { %v213_v9 = vmul.f32 %v495_v6, %v212_v8  ;;  %374 = vmatpush.msra.mxu0 %v357_v38 }
  0x2b   : > { %v214_v10 = vmul.f32 15.0, %v213_v9  ;;  %375 = vmatpush.msra.mxu0 %v356_v42 }
  0x2d   : > { %v215_v11 = vfloor.f32 %v214_v10  ;;  %376 = vmatpush.msra.mxu0 %v355_v43 }
  0x2f   : > { %v216_v12 = vmax.f32 %v215_v11, 0.0  ;;  %377 = vmatpush.msra.mxu0 %v354_v44 }
  0x31   : > { %v217_v13 = vmin.f32 %v216_v12, 14.0  ;;  %378 = vmatpush.msra.mxu0 %v353_v45 }
  0x33   : > { %v805_v14 = vcvt.f32.s32 %v217_v13  ;;  %379 = vmatpush.msra.mxu0 %v352_v51 }
  0x35   : > { %225 = vrot.lane.b32.xlu1 %v805_v14, %s707_s11  ;;  %221 = vrot.lane.b32.xlu0 %v805_v14, %s708_s18  ;;  %v219_v15 = vcvt.s32.f32 %v805_v14 }
  0x36   : > { %227 = vrot.lane.b32.xlu2 %v805_v14, %s709_s19  ;;  %380 = vmatpush.msra.mxu0 %v351_v52 }
  0x37   : > { %v814_v16 = vsub.f32 %v214_v10, %v219_v15 }
  0x38   : > { %381 = vmatpush.msra.mxu0 %v350_v54 }
  0x3d   : > { %233 = vrot.lane.b32.xlu1 %v805_v14, %s710_s21  ;;  %223 = vrot.lane.b32.xlu0 %v805_v14, %s711_s23 }
  0x3e   : > { %231 = vrot.lane.b32.xlu2 %v805_v14, %s712_s26 }
  0x45   : > { %229 = vrot.lane.b32.xlu0 %v805_v14, %s713_s27  ;;  %282 = vrot.lane.b32.xlu1 %v814_v16, %s708_s18 }
  0x46   : > { %237 = vrot.lane.b32.xlu2 %v805_v14, %s714_s28 }
  0x4d   : > { %235 = vrot.lane.b32.xlu0 %v805_v14, %s715_s29  ;;  %288 = vrot.lane.b32.xlu1 %v814_v16, %s707_s11  ;;  %s197_s11 = sand.u32 1, %s685_s13  }
  0x4e   : > { %285 = vrot.lane.b32.xlu2 %v814_v16, %s711_s23  ;;  %s493_s18 = sshll.u32 %s197_s11, 3 }
  0x55   : > { %291 = vrot.lane.b32.xlu0 %v814_v16, %s709_s19  ;;  %297 = vrot.lane.b32.xlu1 %v814_v16, %s712_s26  ;;  %s497_s19 = sshll.u32 %s693_s15, 3 }
  0x56   : > { %294 = vrot.lane.b32.xlu2 %v814_v16, %s713_s27  ;;  %s399_s26 = scalar_lea.hbm %s928_s3, %s497_s19  ;;  %s199_s27 = scalar_lea.vmem [#allocation5], %s493_s18 }
  0x5d   : > { %300 = vrot.lane.b32.xlu0 %v814_v16, %s710_s21  ;;  %239 = vrot.lane.b32.xlu1 %v805_v14, %s716_s30 }
  0x5e   : > { %303 = vrot.lane.b32.xlu2 %v814_v16, %s715_s29  ;;  %s403_s29 = sshll.u32 %s399_s26, 4  ;;  %s404_s29 = int_to_ptr.hbm [resolvable:$true] %s403_s29 }
  0x65   : > { %241 = vrot.lane.b32.xlu0 %v805_v14, %s717_s4  ;;  %306 = vrot.lane.b32.xlu1 %v814_v16, %s714_s28  ;;  %s401_s28 = sshll.u32 %s199_s27, 4  ;;  %s402_s28 = int_to_ptr.vmem [resolvable:$true] %s401_s28 }
  0x66   : > { %243 = vrot.lane.b32.xlu2 %v805_v14, %s718_s5 }
  0x6d   : > { %309 = vrot.lane.b32.xlu0 %v814_v16, %s716_s30  ;;  %245 = vrot.lane.b32.xlu1 %v805_v14, %s719_s6  ;;  %s388_s30 = scalar_lea.sflag [#allocation4], %s197_s11 }
  0x6e   : > { %312 = vrot.lane.b32.xlu2 %v814_v16, %s717_s4  ;;  %s633_s4 = sshra.s32 %s404_s29, 4  ;;  %s634_s4 = int_to_ptr.hbm [resolvable:$true] %s633_s4 }
  0x6f   : > { %p640_p5 = scmp.lt.s32.totalorder %s634_s4, %s928_s3 }
  0x75   : > { %247 = vrot.lane.b32.xlu0 %v805_v14, %s720_s7  ;;  %315 = vrot.lane.b32.xlu1 %v814_v16, %s718_s5  ;;  %s635_s5 = scalar_lea.hbm %s634_s4, 8 }
  0x76   : > { %249 = vrot.lane.b32.xlu2 %v805_v14, %s721_s8  ;;  %p636_p1 = scmp.ne.s32.totalorder %s634_s4, %s635_s5 }
  0x78   : > { %p637_p2 = pnand %p636_p1, %p782_p4 }
  0x7a   : > { %p638_p3 = pneg %p637_p2 }
  0x7d   : > { %318 = vrot.lane.b32.xlu0 %v814_v16, %s719_s6  ;;  %321 = vrot.lane.b32.xlu1 %v814_v16, %s720_s7  ;;  %s639_s7 = scalar_lea.hbm %s928_s3, 16 }
  0x7e   : > { %324 = vrot.lane.b32.xlu2 %v814_v16, %s721_s8  ;;  %p641_p6 = scmp.lt.s32.totalorder %s639_s7, %s635_s5 }
  0x80   : > { %p642_p7 = por %p641_p6, %p640_p5 }
  0x82   : > { %p643_p9 = pnand %p642_p7, %p638_p3 }
  0x90   : > { %v228_v17 = vpop.permute.xlu2 %227 }
  0x98   : > { %v840_v18 = vpop.permute.xlu2 %231 }
  0xa0   : > { %v842_v21 = vpop.permute.xlu2 %237 }
  0xa7   : > { %v226_v19 = vpop.permute.xlu1 %225  ;;  %v222_v20 = vpop.permute.xlu0 %221 }
  0xa8   : > { %v286_v25 = vpop.permute.xlu2 %285  ;;  %v252_v46 = vsel %vm251_vm1, %v805_v14, %v222_v20 }
  0xaf   : > { %v844_v22 = vpop.permute.xlu1 %233  ;;  %v224_v23 = vpop.permute.xlu0 %223 }
  0xb0   : > { %v846_v31 = vpop.permute.xlu2 %294  ;;  %v254_v49 = vsel %vm253_vm2, %v252_v46, %v224_v23 }
  0xb1   : > { %v256_v53 = vsel %vm255_vm3, %v254_v49, %v226_v19 }
  0xb2   : > { %v258_v55 = vsel %vm257_vm4, %v256_v53, %v228_v17 }
  0xb7   : > { %v230_v26 = vpop.permute.xlu0 %229  ;;  %v283_v27 = vpop.permute.xlu1 %282 }
  0xb8   : > { %v848_v39 = vpop.permute.xlu2 %303  ;;  %v260_v56 = vsel %vm259_vm5, %v258_v55, %v230_v26  ;;  %v327_v60 = vsel %vm251_vm1, %v814_v16, %v283_v27 }
  0xb9   : > { %v262_v59 = vsel %vm261_vm6, %v260_v56, %v840_v18  ;;  %v328_v62 = vsel %vm253_vm2, %v327_v60, %v286_v25 }
  0xba   : > { %v264_v63 = vsel %vm263_vm7, %v262_v59, %v844_v22 }
  0xbf   : > { %v236_v33 = vpop.permute.xlu0 %235  ;;  %v289_v34 = vpop.permute.xlu1 %288 }
  0xc0   : > { %v244_v50 = vpop.permute.xlu2 %243  ;;  %v266_v0 = vsel %vm265_vm8, %v264_v63, %v236_v33  ;;  %v329_v1 = vsel %vm255_vm3, %v328_v62, %v289_v34 }
  0xc1   : > { %v268_v5 = vsel %vm267_vm9, %v266_v0, %v842_v21 }
  0xc7   : > { %v292_v40 = vpop.permute.xlu0 %291  ;;  %v298_v41 = vpop.permute.xlu1 %297 }
  0xc8   : > { %v313_v61 = vpop.permute.xlu2 %312  ;;  %v330_v2 = vsel %vm257_vm4, %v329_v1, %v292_v40 }
  0xc9   : > { %v331_v6 = vsel %vm259_vm5, %v330_v2, %v846_v31 }
  0xca   : > { %v332_v10 = vsel %vm261_vm6, %v331_v6, %v298_v41 }
  0xcf   : > { %v301_v47 = vpop.permute.xlu0 %300  ;;  %v240_v48 = vpop.permute.xlu1 %239 }
  0xd0   : > { %v270_v7 = vsel %vm269_vm10, %v268_v5, %v240_v48  ;;  %v250_v9 = vpop.permute.xlu2 %249  ;;  %v333_v11 = vsel %vm263_vm7, %v332_v10, %v301_v47 }
  0xd1   : > { %v334_v17 = vsel %vm265_vm8, %v333_v11, %v848_v39 }
  0xd7   : > { %v242_v57 = vpop.permute.xlu0 %241  ;;  %v307_v58 = vpop.permute.xlu1 %306 }
  0xd8   : > { %v272_v8 = vsel %vm271_vm11, %v270_v7, %v242_v57  ;;  %v335_v18 = vsel %vm267_vm9, %v334_v17, %v307_v58  ;;  %v325_v23 = vpop.permute.xlu2 %324 }
  0xd9   : > { %v274_v12 = vsel %vm273_vm12, %v272_v8, %v244_v50 }
  0xdf   : > { %v310_v3 = vpop.permute.xlu0 %309  ;;  %v246_v4 = vpop.permute.xlu1 %245 }
  0xe0   : > { %v276_v13 = vsel %vm275_vm13, %v274_v12, %v246_v4  ;;  %v336_v19 = vsel %vm269_vm10, %v335_v18, %v310_v3 }
  0xe1   : > { %v337_v21 = vsel %vm271_vm11, %v336_v19, %v313_v61 }
  0xe7   : > { %v248_v14 = vpop.permute.xlu0 %247  ;;  %v316_v15 = vpop.permute.xlu1 %315 }
  0xe8   : > { %v278_v16 = vsel %vm277_vm14, %v276_v13, %v248_v14  ;;  %v338_v24 = vsel %vm273_vm12, %v337_v21, %v316_v15 }
  0xe9   : > { %v280_v20 = vsel %vm279_vm15, %v278_v16, %v250_v9 }
  0xea   : > { %v346_v22 = vadd.s32 1, %v280_v20  ;;  %vm344_vm1 = vcmp.eq.s32.totalorder %v586_v28, %v280_v20 }
  0xec   : > { %vm347_vm0 = vcmp.eq.s32.totalorder %v586_v28, %v346_v22 }
  0xef   : > { %v319_v25 = vpop.permute.xlu0 %318  ;;  %v322_v26 = vpop.permute.xlu1 %321 }
  0xf0   : > { %v339_v27 = vsel %vm275_vm13, %v338_v24, %v319_v25 }
  0xf1   : > { %v340_v29 = vsel %vm277_vm14, %v339_v27, %v322_v26 }
  0xf2   : > { %v341_v30 = vsel %vm279_vm15, %v340_v29, %v325_v23 }
  0xf3   : > { %v345_v31 = vsub.f32 1.0, %v341_v30  ;;  %v348_v32 = vsel %vm347_vm0, %v341_v30, 0.0 }
  0xf5   : > { %v349_v33 = vsel %vm344_vm1, %v345_v31, %v348_v32 }
  0xf6   : > { %382 = vmatmul.f32.vlgmr.msra.gmra.mxu0 %v349_v33 }
 0x173   : > { %v383_v34 = vpop.f32.mrf.mxu0 }
 0x174   : > { %386 = vst [vmem:[%s199_s27] sm:$0xff] %v383_v34 }
 0x175   : > { %646 = shalt.err (!%p643_p9)
}
 0x176   : > { %506 = dma.vmem_to_hbm [thread:$0]  (%p782_p4), %s402_s28, 128, %s404_s29, %s388_s30  }
 0x177 PF: > { %p518_p10 = scmp.ge.s32.totalorder %s701_s17, 2  ;;  %s415_s10 = sand.u32 1, %s681_s12  }
 0x178   : > { %s416_s11 = scalar_lea.sflag [#allocation4], %s415_s10 }
 0x179   : > { %p513_p11 = pnand %p518_p10, %p789_p8 }
 0x17b   : > { %p514_p12 = pneg %p513_p11 }
 0x17d   : > { %676 = dma.done.wait (%p514_p12), %s416_s11, 128  }
 0x17e   : > { %678 = vsyncadd (%p514_p12), %s416_s11, 4294967168  ;;  %s17_s17 = sadd.s32 1, %s701_s17   ;;  %s931_s12 = smov %s685_s13 }
 0x17f   : > { %p14_p13 = scmp.ge.s32.totalorder %s17_s17, 4   ;;  %s932_s13 = smov %s689_s14 }
 0x180   : > { %s933_s14 = smov %s795_s25  ;;  %s934_s15 = smov %s697_s16 }
 0x181   : > { %s935_s16 = smov %s937_s20  ;;  %16 = sbr.rel (!%p14_p13) target bundleno = 5 (0x5), region = 73 }
 0x186   :  { %422 = vsyncpa [#allocation3], 1 }
 0x187   :  { %424 = vsyncpa [#allocation3 + $0x1], 1 }
 0x188   :  { %425 = vsyncpa [#allocation4], 1 }
 0x189   :  { %427 = vsyncpa [#allocation4 + $0x1], 1 }

</bundles_post_ra>
